<compile_context>
chip_gen: v7x
topology: tpu7x:2x2x1
jax: 0.10.0
libtpu: 0.0.40
codegen_flags: <defaults>
</compile_context>

<pallas_src>
import functools

import jax
import jax.numpy as jnp
from jax.experimental import pallas as pl
from jax.experimental.pallas import tpu as pltpu

LANE = 128     # TPU lane width; hidden/output feature dims are zero-padded to this.
SUBLANE = 8    # f32 sublane granularity.


def _round_up(x, m):
    return ((x + m - 1) // m) * m


def _ceil_div(a, b):
    return (a + b - 1) // b


def deterministic_policy_kernel(obs_ref, w_ref, bh_ref, out_ref):
    """One batch tile of the MLP hot path, entirely in VMEM.

    obs_ref: (B_TILE, obs_dim_r)  observations (lane dim == full array dim, no 128-pad)
    w_ref:   (3, 128, 128)        zero-padded weights, stored transposed (in, out)
    bh_ref:  (4, 128)             rows 0..2 = biases b1,b2,b3; row 3 = action-space high
    out_ref: (B_TILE, act_dim)    actions (lane dim == full array dim, no 128-pad)
    """
    obs_dim = obs_ref.shape[1]
    act_dim = out_ref.shape[1]

    x = obs_ref[...]

    # Layer 1: contract only the real obs_dim rows of the padded weight tile.
    h = jnp.dot(x, w_ref[0, :obs_dim, :], preferred_element_type=jnp.float32)
    h = jnp.maximum(h + bh_ref[0:1, :], 0.0)            # activation_func = relu

    h = jnp.dot(h, w_ref[1], preferred_element_type=jnp.float32)
    h = jnp.maximum(h + bh_ref[1:2, :], 0.0)            # activation_func = relu

    a = jnp.dot(h, w_ref[2], preferred_element_type=jnp.float32) + bh_ref[2:3, :]

    # final_activation_func = tanh, then scale by action_space.high; store only
    # the real act_dim lanes (lane-narrow block == full out-array width).
    out_ref[...] = bh_ref[3:4, :act_dim] * jnp.tanh(a[:, :act_dim])


def _pad2(w):
    assert w.shape[0] <= LANE and w.shape[1] <= LANE, "layer width must be <= 128"
    out = jnp.zeros((LANE, LANE), jnp.float32)
    return out.at[: w.shape[0], : w.shape[1]].set(w.astype(jnp.float32))


def _pad1(v):
    v = jnp.asarray(v, jnp.float32).reshape(-1)
    assert v.shape[0] <= LANE, "layer width must be <= 128"
    out = jnp.zeros((LANE,), jnp.float32)
    return out.at[: v.shape[0]].set(v)


def pack_params(params, high):
    """Pack (W1,b1,W2,b2,W3,b3,high) into two padded operands (call ONCE, reuse)."""
    w1, b1, w2, b2, w3, b3 = params
    w_packed = jnp.stack([_pad2(w1), _pad2(w2), _pad2(w3)])                # (3,128,128)
    bh_packed = jnp.stack([_pad1(b1), _pad1(b2), _pad1(b3), _pad1(high)])  # (4,128)
    return w_packed, bh_packed


def _choose_tiling(batch, max_b_tile):
    """>=2 and even tile count (v7x: both TCs get balanced work); big tiles for
    large batches (v5e/v6e: fewer serial grid steps, better HBM roofline)."""
    n = max(2, _ceil_div(batch, max_b_tile))
    n += n % 2                                           # even tile count
    b_tile = max(SUBLANE, _round_up(_ceil_div(batch, n), SUBLANE))
    n_tiles = _ceil_div(batch, b_tile)
    return b_tile, n_tiles


@functools.partial(jax.jit, static_argnames=("act_dim", "max_b_tile"))
def deterministic_policy_forward(obs, w_packed, bh_packed, *, act_dim, max_b_tile=512):
    """Batch-tiled forward: grid over batch, packed params resident across steps."""
    B, obs_dim = obs.shape
    assert obs_dim <= LANE and act_dim <= LANE, "feature widths must be <= 128"

    obs_dim_r = _round_up(obs_dim, SUBLANE)
    b_tile, n_tiles = _choose_tiling(B, max_b_tile)
    B_pad = n_tiles * b_tile

    obs = obs.astype(jnp.float32)
    if B_pad != B or obs_dim_r != obs_dim:
        # Only pads when the batch doesn't tile evenly / obs_dim isn't 8-aligned.
        obs_in = jnp.zeros((B_pad, obs_dim_r), jnp.float32).at[:B, :obs_dim].set(obs)
    else:
        obs_in = obs

    out = pl.pallas_call(
        deterministic_policy_kernel,
        out_shape=jax.ShapeDtypeStruct((B_pad, act_dim), jnp.float32),
        grid=(n_tiles,),
        in_specs=[
            pl.BlockSpec((b_tile, obs_dim_r), lambda i: (i, 0)),     # obs tile (unpadded lanes)
            pl.BlockSpec((3, LANE, LANE), lambda i: (0, 0, 0)),      # weights (VMEM-resident)
            pl.BlockSpec((4, LANE), lambda i: (0, 0)),               # biases + high (resident)
        ],
        out_specs=pl.BlockSpec((b_tile, act_dim), lambda i: (i, 0)), # direct act_dim-wide output
        compiler_params=pltpu.CompilerParams(
            dimension_semantics=("parallel",)),                      # shard batch over TCs (v7x)
    )(obs_in, w_packed, bh_packed)

    return out if B_pad == B else out[:B]


def init_linear(key, fan_in, fan_out):
    """Deterministic nn.Linear-style init (uniform +/- 1/sqrt(fan_in)).

    Weight is stored as (fan_in, fan_out) == W^T so the kernel does x @ W.
    """
    kw, kb = jax.random.split(key)
    bound = 1.0 / jnp.sqrt(jnp.float32(fan_in))
    w = jax.random.uniform(kw, (fan_in, fan_out), jnp.float32, -bound, bound)
    b = jax.random.uniform(kb, (1, fan_out), jnp.float32, -bound, bound)
    return w, b


def reference_forward(obs, params, high):
    w1, b1, w2, b2, w3, b3 = params
    h1 = jnp.maximum(obs @ w1 + b1, 0.0)
    h2 = jnp.maximum(h1 @ w2 + b2, 0.0)
    return high * jnp.tanh(h2 @ w3 + b3)


if __name__ == "__main__":
    # Small shapes implied by the module: vector obs, two hidden layers, tanh head.
    batch = 256            # tiles into grid=(2,) of 128-row blocks -> both TCs busy on v7x
    obs_dim = 16           # obs_space.shape = (16,)
    hidden_sizes = (32, 32)
    act_dim = 8            # action_space.shape = (8,)

    key = jax.random.PRNGKey(0)
    k_obs, k1, k2, k3, k_high = jax.random.split(key, 5)

    obs = jax.random.normal(k_obs, (batch, obs_dim), jnp.float32)

    w1, b1 = init_linear(k1, obs_dim, hidden_sizes[0])
    w2, b2 = init_linear(k2, hidden_sizes[0], hidden_sizes[1])
    w3, b3 = init_linear(k3, hidden_sizes[1], act_dim)
    params = (w1, b1, w2, b2, w3, b3)

    # action_space.high buffer (deterministic, positive scaling per action dim)
    high = jax.random.uniform(k_high, (1, act_dim), jnp.float32, 0.5, 2.0)

    # Pack parameters ONCE (rollout / target-policy reuse), outside the hot path.
    w_packed, bh_packed = jax.block_until_ready(pack_params(params, high))

    action = deterministic_policy_forward(obs, w_packed, bh_packed, act_dim=act_dim)
    action = jax.block_until_ready(action)

    ref = reference_forward(obs, params, high)
    assert action.shape == (batch, act_dim)
    assert jnp.allclose(action, ref, atol=2e-5, rtol=2e-5)

    print("KERNEL_OK")
</pallas_src>

<mosaic_0001>
module attributes {stable_mosaic.version = 11 : i64} {
  func.func @deterministic_policy_kernel(%arg0: i32, %arg1: memref<128x16xf32, #tpu.memory_space<vmem>>, %arg2: memref<3x128x128xf32, #tpu.memory_space<vmem>>, %arg3: memref<4x128xf32, #tpu.memory_space<vmem>>, %arg4: memref<128x8xf32, #tpu.memory_space<vmem>>) attributes {dimension_semantics = [#tpu.dimension_semantics<parallel>], iteration_bounds = array<i64: 2>, scalar_prefetch = 0 : i64, scratch_operands = 0 : i64, tpu.core_type = #tpu.core_type<tc>, window_params = [{transform_indices = @transform_0, window_bounds = array<i64: 128, 16>}, {pipeline_mode = #tpu.pipeline_mode<synchronous>, transform_indices = @transform_1, window_bounds = array<i64: 3, 128, 128>}, {pipeline_mode = #tpu.pipeline_mode<synchronous>, transform_indices = @transform_2, window_bounds = array<i64: 4, 128>}, {transform_indices = @transform_3, window_bounds = array<i64: 128, 8>}]} {
    %c0 = arith.constant 0 : index
    %c0_0 = arith.constant 0 : index
    %0 = vector.load %arg1[%c0, %c0_0] : memref<128x16xf32, #tpu.memory_space<vmem>>, vector<128x16xf32>
    %c0_1 = arith.constant 0 : index
    %c0_2 = arith.constant 0 : index
    %c0_3 = arith.constant 0 : index
    %1 = vector.load %arg2[%c0_1, %c0_2, %c0_3] : memref<3x128x128xf32, #tpu.memory_space<vmem>>, vector<1x16x128xf32>
    %2 = vector.shape_cast %1 : vector<1x16x128xf32> to vector<16x128xf32>
    %cst = arith.constant dense<0.000000e+00> : vector<128x128xf32>
    %3 = tpu.matmul %0, %2, %cst {dimension_numbers = #tpu.dot_dimension_numbers<[1], [0], [0], [1], [0, 0, 1, 1], [], []>} : vector<128x16xf32>, vector<16x128xf32>, vector<128x128xf32> -> vector<128x128xf32>
    %c0_4 = arith.constant 0 : index
    %c0_5 = arith.constant 0 : index
    %4 = vector.load %arg3[%c0_4, %c0_5] : memref<4x128xf32, #tpu.memory_space<vmem>>, vector<1x128xf32>
    %5 = vector.broadcast %4 : vector<1x128xf32> to vector<128x128xf32>
    %6 = arith.addf %3, %5 : vector<128x128xf32>
    %cst_6 = arith.constant 0.000000e+00 : f32
    %7 = vector.broadcast %cst_6 : f32 to vector<128x128xf32>
    %8 = arith.maximumf %6, %7 : vector<128x128xf32>
    %c1 = arith.constant 1 : index
    %c0_7 = arith.constant 0 : index
    %c0_8 = arith.constant 0 : index
    %9 = vector.load %arg2[%c1, %c0_7, %c0_8] : memref<3x128x128xf32, #tpu.memory_space<vmem>>, vector<1x128x128xf32>
    %10 = vector.shape_cast %9 : vector<1x128x128xf32> to vector<128x128xf32>
    %cst_9 = arith.constant dense<0.000000e+00> : vector<128x128xf32>
    %11 = tpu.matmul %8, %10, %cst_9 {dimension_numbers = #tpu.dot_dimension_numbers<[1], [0], [0], [1], [0, 0, 1, 1], [], []>} : vector<128x128xf32>, vector<128x128xf32>, vector<128x128xf32> -> vector<128x128xf32>
    %c1_10 = arith.constant 1 : index
    %c0_11 = arith.constant 0 : index
    %12 = vector.load %arg3[%c1_10, %c0_11] : memref<4x128xf32, #tpu.memory_space<vmem>>, vector<1x128xf32>
    %13 = vector.broadcast %12 : vector<1x128xf32> to vector<128x128xf32>
    %14 = arith.addf %11, %13 : vector<128x128xf32>
    %cst_12 = arith.constant 0.000000e+00 : f32
    %15 = vector.broadcast %cst_12 : f32 to vector<128x128xf32>
    %16 = arith.maximumf %14, %15 : vector<128x128xf32>
    %c2 = arith.constant 2 : index
    %c0_13 = arith.constant 0 : index
    %c0_14 = arith.constant 0 : index
    %17 = vector.load %arg2[%c2, %c0_13, %c0_14] : memref<3x128x128xf32, #tpu.memory_space<vmem>>, vector<1x128x128xf32>
    %18 = vector.shape_cast %17 : vector<1x128x128xf32> to vector<128x128xf32>
    %cst_15 = arith.constant dense<0.000000e+00> : vector<128x128xf32>
    %19 = tpu.matmul %16, %18, %cst_15 {dimension_numbers = #tpu.dot_dimension_numbers<[1], [0], [0], [1], [0, 0, 1, 1], [], []>} : vector<128x128xf32>, vector<128x128xf32>, vector<128x128xf32> -> vector<128x128xf32>
    %c2_16 = arith.constant 2 : index
    %c0_17 = arith.constant 0 : index
    %20 = vector.load %arg3[%c2_16, %c0_17] : memref<4x128xf32, #tpu.memory_space<vmem>>, vector<1x128xf32>
    %21 = vector.broadcast %20 : vector<1x128xf32> to vector<128x128xf32>
    %22 = arith.addf %19, %21 : vector<128x128xf32>
    %c3 = arith.constant 3 : index
    %c0_18 = arith.constant 0 : index
    %23 = vector.load %arg3[%c3, %c0_18] : memref<4x128xf32, #tpu.memory_space<vmem>>, vector<1x8xf32>
    %24 = vector.extract_strided_slice %22 {offsets = [0, 0], sizes = [128, 8], strides = [1, 1]} : vector<128x128xf32> to vector<128x8xf32>
    %25 = math.tanh %24 : vector<128x8xf32>
    %26 = vector.broadcast %23 : vector<1x8xf32> to vector<128x8xf32>
    %27 = arith.mulf %26, %25 : vector<128x8xf32>
    %c0_19 = arith.constant 0 : index
    %c0_20 = arith.constant 0 : index
    %28 = vector.load %arg4[%c0_19, %c0_20] : memref<128x8xf32, #tpu.memory_space<vmem>>, vector<128x8xf32>
    tpu.vector_store %arg4[%c0_19, %c0_20], %27 {strides = array<i32>} : memref<128x8xf32, #tpu.memory_space<vmem>>, vector<128x8xf32>,
    return
  }
  func.func @transform_0(%arg0: i32) -> (i32, i32) {
    %c0_i32 = arith.constant 0 : i32
    %c0_i32_0 = arith.constant 0 : i32
    return %arg0, %c0_i32 : i32, i32
  }
  func.func @transform_1(%arg0: i32) -> (i32, i32, i32) {
    %c0_i32 = arith.constant 0 : i32
    %c0_i32_0 = arith.constant 0 : i32
    %c0_i32_1 = arith.constant 0 : i32
    %c0_i32_2 = arith.constant 0 : i32
    return %c0_i32, %c0_i32_0, %c0_i32_1 : i32, i32, i32
  }
  func.func @transform_2(%arg0: i32) -> (i32, i32) {
    %c0_i32 = arith.constant 0 : i32
    %c0_i32_0 = arith.constant 0 : i32
    %c0_i32_1 = arith.constant 0 : i32
    return %c0_i32, %c0_i32_0 : i32, i32
  }
  func.func @transform_3(%arg0: i32) -> (i32, i32) {
    %c0_i32 = arith.constant 0 : i32
    %c0_i32_0 = arith.constant 0 : i32
    return %arg0, %c0_i32 : i32, i32
  }
}

</mosaic_0001>

<bundles_post_ra>
// kernel: deterministic_policy_forward.1
= control target key start
LH: loop header
LB: loop body
LE: loop exit
PB: predicated region body
PF: predicated region fallthrough
CT: control target
= control target key end

     0   :  { %8 = vsyncpa [#allocation3], 0  ;;  %s1333_s12 = smov 0   ;;  %s1515_s0 = inlined_call_operand.vmem [shape: f32[256,16], index: 0, kind: input, shape index: {}]   ;;  %s1516_s1 = inlined_call_operand.hbm [shape: f32[3,128,128], index: 1, kind: input, shape index: {}]   ;;  %s1517_s2 = inlined_call_operand.vmem [shape: f32[4,128], index: 2, kind: input, shape index: {}]   ;;  %s1518_s3 = inlined_call_operand.vmem [shape: f32[256,8], index: 3, kind: output, shape index: {}]  }
   0x1 LB: > { %s894_s13 = sadd.s32 4294967295, %s1308_s12   ;;  %p896_p0 = scmp.ge.s32.totalorder %s1308_s12, 1  ;;  %s1308_s12 = sphi %s1333_s12, %s14_s12  }
   0x2   : > { %p113_p1 = scmp.lt.s32.totalorder %s1308_s12, 3  ;;  %s1310_s14 = smov [#allocation2]  }
   0x3   : > { %s125_s15 = sshll.u32 %s1310_s14, 4  ;;  %p1347_p3 = scmp.eq.s32.totalorder %s894_s13, 0  ;;  %s126_s15 = int_to_ptr.vmem [resolvable:$true] %s125_s15 }
   0x4   : > { %p1341_p2 = pnand %p896_p0, %p113_p1  ;;  %s1270_s21 = scalar_lea.hbm %s1516_s1, 6144 }
   0x5   : > { %s1523_s17 = scalar_select %p1347_p3, 1, 0 }
   0x6   : > { %s1522_s16 = scalar_select %p1341_p2, 1, 0 }
   0x7   : > { %p1221_p4 = pneg %p1341_p2  ;;  %p1271_p6 = scmp.ne.s32.totalorder %s1516_s1, %s1270_s21 }
   0x8   : > { %p1277_p10 = scmp.lt.u32.totalorder %s1270_s21, %s1516_s1 }
   0x9   : > { %p1355_p5 = pnand %p1347_p3, %p1221_p4 }
   0xb   : > { %p1272_p7 = pneg %p1355_p5 }
   0xd   : > { %p1273_p8 = pnand %p1272_p7, %p1271_p6 }
   0xf   : > { %p1274_p9 = pneg %p1273_p8 }
  0x11   : > { %p1279_p11 = pnand %p1277_p10, %p1274_p9 }
  0x13   : > { %1282 = shalt.err (!%p1279_p11)
}
  0x14   : > { %s1283_s26 = scalar_lea.vmem %s126_s15, 6144  ;;  %p1291_p1 = scmp.lt.s32.totalorder %s126_s15, %s126_s15 }
  0x15   : > { %p1284_p12 = scmp.ne.s32.totalorder %s126_s15, %s1283_s26  ;;  %p1292_p4 = scmp.lt.s32.totalorder %s1283_s26, %s1283_s26 }
  0x17   : > { %p1286_p13 = pnand %p1284_p12, %p1272_p7  ;;  %p1293_p3 = por %p1292_p4, %p1291_p1 }
  0x19   : > { %p1287_p0 = pneg %p1286_p13 }
  0x1b   : > { %p1294_p2 = pnand %p1293_p3, %p1287_p0 }
  0x1d   : > { %1297 = shalt.err (!%p1294_p2)
}
  0x1e   : > { %s1311_s27 = smov 128   ;;  %s1312_s28 = smov 8  }
  0x1f   : > { %1224 = dma.hbm_to_vmem [thread:$0]  (!%p1355_p5), %s1516_s1, 6144, %s126_s15, [#allocation3], %s1311_s27, %s1311_s27, %s1312_s28  }
  0x20   : > { %p1525_p6 = scmp.ne.s32.totalorder %s1522_s16, 0 }
  0x21   : > { %p1526_p8 = scmp.ne.s32.totalorder (!%p1525_p6), %s1523_s17, 0 }
  0x22   : > { %153 = sbr.rel (%p1525_p6) target bundleno = 743 (0x2e7), region = 32 }
  0x29   : > { %1303 = dma.done.wait (%p1526_p8), [#allocation3], 6144  }
  0x2a   : > { %1305 = vsyncadd (%p1526_p8), [#allocation3], 4294961152  ;;  %s901_s4 = sshll.u32 %s894_s13, 4  ;;  %vm212_vm0 = vcmask 130048   ;;  %v205_v0 = vld [vmem:[#allocation2] sm:$0xff]  ;;  %v206_v1 = vld [vmem:[#allocation2 + $0x8] sm:$0xff] }
  0x2b   : > { %p178_p2 = scmp.lt.s32.totalorder %s901_s4, 31  ;;  %v1149_v3 = vpack.c.bf16 %v206_v1, %v205_v0  ;;  %v423_v6 = vld [vmem:[#allocation2 + $0x80] sm:$0xff]  ;;  %v424_v7 = vld [vmem:[#allocation2 + $0x88] sm:$0xff]  ;;  %v425_v8 = vld [vmem:[#allocation2 + $0x90] sm:$0xff]  ;;  %vm809_vm1 = vcmask 64512  }
  0x2c   : > { %v1153_v9 = vpack.c.bf16 %v424_v7, %v423_v6  ;;  %v426_v10 = vld [vmem:[#allocation2 + $0x98] sm:$0xff]  ;;  %v427_v13 = vld [vmem:[#allocation2 + $0xa0] sm:$0xff]  ;;  %v428_v14 = vld [vmem:[#allocation2 + $0xa8] sm:$0xff] }
  0x2d   : > { %s1528_s4 = smov (!%p178_p2, %s901_s4), 31  ;;  %1150 = vmatprep.subr.bf16.mxu0 %v1149_v3  ;;  %v1157_v12 = vpack.c.bf16 %v426_v10, %v425_v8  ;;  %v1161_v16 = vpack.c.bf16 %v428_v14, %v427_v13  ;;  %v429_v18 = vld [vmem:[#allocation2 + $0xb0] sm:$0xff]  ;;  %v430_v19 = vld [vmem:[#allocation2 + $0xb8] sm:$0xff]  ;;  %v431_v23 = vld [vmem:[#allocation2 + $0xc0] sm:$0xff] }
  0x2e   : > { %s902_s5 = sshll.u32 %s1528_s4, 3  ;;  %1152 = vmatpush3.bf16.msra.mxu0 %v1149_v3  ;;  %1154 = vmatprep.subr.bf16.mxu1 %v1153_v9  ;;  %v1165_v21 = vpack.c.bf16 %v430_v19, %v429_v18  ;;  %v432_v24 = vld [vmem:[#allocation2 + $0xc8] sm:$0xff]  ;;  %v433_v28 = vld [vmem:[#allocation2 + $0xd0] sm:$0xff]  ;;  %v434_v29 = vld [vmem:[#allocation2 + $0xd8] sm:$0xff] }
  0x2f   : > { %s1391_s8 = scalar_lea.vmem %s1515_s0, %s902_s5  ;;  %1156 = vmatpush3.bf16.msra.mxu1 %v1153_v9  ;;  %v1169_v26 = vpack.c.bf16 %v432_v24, %v431_v23  ;;  %v1173_v31 = vpack.c.bf16 %v434_v29, %v433_v28  ;;  %v435_v33 = vld [vmem:[#allocation2 + $0xe0] sm:$0xff]  ;;  %v436_v34 = vld [vmem:[#allocation2 + $0xe8] sm:$0xff]  ;;  %v437_v40 = vld [vmem:[#allocation2 + $0xf0] sm:$0xff]  ;;  %s1452_s20 = scalar_lea.vmem %s1518_s3, %s902_s5 }
  0x30   : > { %v189_v2 = vld [vmem:[%s1391_s8] sm:$0xff]  ;;  %v190_v4 = vld [vmem:[%s1391_s8 + $0x8] sm:$0xff]  ;;  %v191_v5 = vld [vmem:[%s1391_s8 + $0x10] sm:$0xff]  ;;  %1158 = vmatprep.subr.bf16.mxu1 %v1157_v12  ;;  %v1177_v36 = vpack.c.bf16 %v436_v34, %v435_v33 }
  0x31   : > { %1013 = vmatprep.mubr.msk.f32.mxu0 %vm212_vm0, %v189_v2  ;;  %v192_v11 = vld [vmem:[%s1391_s8 + $0x18] sm:$0xff]  ;;  %v193_v15 = vld [vmem:[%s1391_s8 + $0x20] sm:$0xff]  ;;  %v194_v17 = vld [vmem:[%s1391_s8 + $0x28] sm:$0xff] }
  0x32   : > { %1014 = vmatmul.mubr.msk.f32.vlgmr.msra.gmra.mrb[0].mxu0 %vm212_vm0, %v190_v4  ;;  %v195_v20 = vld [vmem:[%s1391_s8 + $0x30] sm:$0xff]  ;;  %v196_v22 = vld [vmem:[%s1391_s8 + $0x38] sm:$0xff]  ;;  %v197_v25 = vld [vmem:[%s1391_s8 + $0x40] sm:$0xff] }
  0x33   : > { %1016 = vmatprep.mubr.msk.f32.mxu0 %vm212_vm0, %v191_v5  ;;  %1160 = vmatpush3.bf16.msra.mxu1 %v1157_v12  ;;  %v198_v27 = vld [vmem:[%s1391_s8 + $0x48] sm:$0xff]  ;;  %v199_v30 = vld [vmem:[%s1391_s8 + $0x50] sm:$0xff]  ;;  %v200_v32 = vld [vmem:[%s1391_s8 + $0x58] sm:$0xff] }
  0x34   : > { %1162 = vmatprep.subr.bf16.mxu1 %v1161_v16  ;;  %v201_v35 = vld [vmem:[%s1391_s8 + $0x60] sm:$0xff]  ;;  %v202_v37 = vld [vmem:[%s1391_s8 + $0x68] sm:$0xff]  ;;  %v203_v38 = vld [vmem:[%s1391_s8 + $0x70] sm:$0xff] }
  0x35   : > { %v204_v39 = vld [vmem:[%s1391_s8 + $0x78] sm:$0xff]  ;;  %v606_v43 = vld [vmem:[#allocation2 + $0x100] sm:$0xff]  ;;  %v607_v44 = vld [vmem:[#allocation2 + $0x108] sm:$0xff] }
  0x36   : > { %1017 = vmatmul.mubr.msk.f32.gmra.mrb[2].mxu0 %vm212_vm0, %v192_v11  ;;  %v438_v41 = vld [vmem:[#allocation2 + $0xf8] sm:$0xff]  ;;  %v608_v45 = vld [vmem:[#allocation2 + $0x110] sm:$0xff]  ;;  %v1185_v46 = vpack.c.bf16 %v607_v44, %v606_v43  ;;  %v610_v49 = vld [vmem:[#allocation2 + $0x120] sm:$0xff] }
  0x37   : > { %1019 = vmatprep.mubr.msk.f32.mxu0 %vm212_vm0, %v193_v15  ;;  %1164 = vmatpush3.bf16.msra.mxu1 %v1161_v16  ;;  %v1181_v42 = vpack.c.bf16 %v438_v41, %v437_v40  ;;  %v609_v47 = vld [vmem:[#allocation2 + $0x118] sm:$0xff]  ;;  %v611_v50 = vld [vmem:[#allocation2 + $0x128] sm:$0xff]  ;;  %v612_v52 = vld [vmem:[#allocation2 + $0x130] sm:$0xff] }
  0x38   : > { %1166 = vmatprep.subr.bf16.mxu1 %v1165_v21  ;;  %v1189_v48 = vpack.c.bf16 %v609_v47, %v608_v45  ;;  %1186 = vmatprep.subr.bf16.mxu0 %v1185_v46  ;;  %v1193_v51 = vpack.c.bf16 %v611_v50, %v610_v49  ;;  %v613_v53 = vld [vmem:[#allocation2 + $0x138] sm:$0xff]  ;;  %v614_v55 = vld [vmem:[#allocation2 + $0x140] sm:$0xff]  ;;  %v615_v56 = vld [vmem:[#allocation2 + $0x148] sm:$0xff] }
  0x39   : > { %1188 = vmatpush3.bf16.msra.mxu0 %v1185_v46  ;;  %v1197_v54 = vpack.c.bf16 %v613_v53, %v612_v52  ;;  %v1201_v57 = vpack.c.bf16 %v615_v56, %v614_v55  ;;  %v616_v58 = vld [vmem:[#allocation2 + $0x150] sm:$0xff]  ;;  %v617_v59 = vld [vmem:[#allocation2 + $0x158] sm:$0xff]  ;;  %v618_v61 = vld [vmem:[#allocation2 + $0x160] sm:$0xff] }
  0x3a   : > { %1020 = vmatmul.mubr.msk.f32.gmra.mrb[4].mxu0 %vm212_vm0, %v194_v17  ;;  %1190 = vmatprep.subr.bf16.mxu0 %v1189_v48  ;;  %v1205_v60 = vpack.c.bf16 %v617_v59, %v616_v58  ;;  %v619_v62 = vld [vmem:[#allocation2 + $0x168] sm:$0xff]  ;;  %v905_v0 = vld [vmem:[%s1517_s2] ss:$0 sm:$0xff]  ;;  %v620_v49 = vld [vmem:[#allocation2 + $0x170] sm:$0xff] }
  0x3b   : > { %1022 = vmatprep.mubr.msk.f32.mxu0 %vm212_vm0, %v195_v20  ;;  %1168 = vmatpush3.bf16.msra.mxu1 %v1165_v21  ;;  %v1209_v63 = vpack.c.bf16 %v619_v62, %v618_v61  ;;  %v621_v50 = vld [vmem:[#allocation2 + $0x178] sm:$0xff]  ;;  %v922_v52 = vld [vmem:[%s1517_s2 + $0x1] ss:$0 sm:$0xff] }
  0x3c   : > { %1170 = vmatprep.subr.bf16.mxu1 %v1169_v26 }
  0x3d   : > { %1192 = vmatpush3.bf16.msra.mxu0 %v1189_v48 }
  0x3e   : > { %1023 = vmatmul.mubr.msk.f32.gmra.mrb[6].mxu0 %vm212_vm0, %v196_v22  ;;  %1194 = vmatprep.subr.bf16.mxu0 %v1193_v51 }
  0x3f   : > { %1025 = vmatprep.mubr.msk.f32.mxu0 %vm212_vm0, %v197_v25  ;;  %1172 = vmatpush3.bf16.msra.mxu1 %v1169_v26 }
  0x40   : > { %1174 = vmatprep.subr.bf16.mxu1 %v1173_v31 }
  0x41   : > { %1196 = vmatpush3.bf16.msra.mxu0 %v1193_v51  ;;  %v1213_v51 = vpack.c.bf16 %v621_v50, %v620_v49  ;;  %v1445_v50 = vld [vmem:[%s1517_s2 + $0x3] ss:$0 sm:$0xff] }
  0x42   : > { %1026 = vmatmul.mubr.msk.f32.gmra.mrb[8].mxu0 %vm212_vm0, %v198_v27  ;;  %1198 = vmatprep.subr.bf16.mxu0 %v1197_v54 }
  0x43   : > { %1028 = vmatprep.mubr.msk.f32.mxu0 %vm212_vm0, %v199_v30  ;;  %1176 = vmatpush3.bf16.msra.mxu1 %v1173_v31 }
  0x44   : > { %1178 = vmatprep.subr.bf16.mxu1 %v1177_v36 }
  0x45   : > { %1200 = vmatpush3.bf16.msra.mxu0 %v1197_v54 }
  0x46   : > { %1029 = vmatmul.mubr.msk.f32.gmra.mrb[10].mxu0 %vm212_vm0, %v200_v32  ;;  %1202 = vmatprep.subr.bf16.mxu0 %v1201_v57 }
  0x47   : > { %1031 = vmatprep.mubr.msk.f32.mxu0 %vm212_vm0, %v201_v35  ;;  %1180 = vmatpush3.bf16.msra.mxu1 %v1177_v36 }
  0x48   : > { %1182 = vmatprep.subr.bf16.mxu1 %v1181_v42 }
  0x49   : > { %1204 = vmatpush3.bf16.msra.mxu0 %v1201_v57 }
  0x4a   : > { %1032 = vmatmul.mubr.msk.f32.gmra.mrb[12].mxu0 %vm212_vm0, %v202_v37  ;;  %1206 = vmatprep.subr.bf16.mxu0 %v1205_v60 }
  0x4b   : > { %1034 = vmatprep.mubr.msk.f32.mxu0 %vm212_vm0, %v203_v38  ;;  %1184 = vmatpush3.bf16.msra.mxu1 %v1181_v42 }
  0x4d   : > { %1208 = vmatpush3.bf16.msra.mxu0 %v1205_v60 }
  0x4e   : > { %1035 = vmatmul.mubr.msk.f32.gmra.mrb[14].mxu0 %vm212_vm0, %v204_v39  ;;  %1210 = vmatprep.subr.bf16.mxu0 %v1209_v63 }
  0x51   : > { %1212 = vmatpush3.bf16.msra.mxu0 %v1209_v63 }
  0x52   : > { %1214 = vmatprep.subr.bf16.mxu0 %v1213_v51 }
  0x55   : > { %1216 = vmatpush3.bf16.msra.mxu0 %v1213_v51 }
 0x105   : > { %v1015_v1 = vpop.f32.mrb[0].mxu0 }
 0x106   : > { %v333_v2 = vadd.f32 %v1015_v1, %v905_v0  ;;  %v327_v3 = vpop.f32.mrb[1].mxu0 }
 0x107   : > { %v328_v4 = vadd.f32 %v905_v0, %v327_v3 }
 0x108   : > { %v407_v7 = vmax.f32 %v333_v2, 0.0 }
 0x109   : > { %v1018_v5 = vpop.f32.mrb[2].mxu0  ;;  %v406_v6 = vmax.f32 %v328_v4, 0.0 }
 0x10a   : > { %v343_v8 = vadd.f32 %v1018_v5, %v905_v0  ;;  %v337_v9 = vpop.f32.mrb[3].mxu0 }
 0x10b   : > { %v338_v10 = vadd.f32 %v905_v0, %v337_v9  ;;  %1069 = vmatprep.mubr.f32.mxu1 %v406_v6 }
 0x10c   : > { %1070 = vmatmul.mubr.f32.vlgmr.msra.gmra.mrb[0].mxu1 %v407_v7  ;;  %v409_v13 = vmax.f32 %v343_v8, 0.0 }
 0x10d   : > { %v408_v11 = vmax.f32 %v338_v10, 0.0  ;;  %v1021_v12 = vpop.f32.mrb[4].mxu0 }
 0x10e   : > { %v353_v14 = vadd.f32 %v1021_v12, %v905_v0  ;;  %v347_v15 = vpop.f32.mrb[5].mxu0 }
 0x10f   : > { %v348_v16 = vadd.f32 %v905_v0, %v347_v15  ;;  %1072 = vmatprep.mubr.f32.mxu1 %v408_v11 }
 0x110   : > { %1073 = vmatmul.mubr.f32.gmra.mrb[2].mxu1 %v409_v13  ;;  %v411_v19 = vmax.f32 %v353_v14, 0.0 }
 0x111   : > { %v410_v17 = vmax.f32 %v348_v16, 0.0  ;;  %v1024_v18 = vpop.f32.mrb[6].mxu0 }
 0x112   : > { %v363_v20 = vadd.f32 %v1024_v18, %v905_v0  ;;  %v357_v21 = vpop.f32.mrb[7].mxu0 }
 0x113   : > { %v358_v22 = vadd.f32 %v905_v0, %v357_v21  ;;  %1075 = vmatprep.mubr.f32.mxu1 %v410_v17 }
 0x114   : > { %1076 = vmatmul.mubr.f32.gmra.mrb[4].mxu1 %v411_v19  ;;  %v413_v25 = vmax.f32 %v363_v20, 0.0 }
 0x115   : > { %v412_v23 = vmax.f32 %v358_v22, 0.0  ;;  %v1027_v24 = vpop.f32.mrb[8].mxu0 }
 0x116   : > { %v373_v26 = vadd.f32 %v1027_v24, %v905_v0  ;;  %v367_v27 = vpop.f32.mrb[9].mxu0 }
 0x117   : > { %v368_v28 = vadd.f32 %v905_v0, %v367_v27  ;;  %1078 = vmatprep.mubr.f32.mxu1 %v412_v23 }
 0x118   : > { %1079 = vmatmul.mubr.f32.gmra.mrb[6].mxu1 %v413_v25  ;;  %v415_v31 = vmax.f32 %v373_v26, 0.0 }
 0x119   : > { %v414_v29 = vmax.f32 %v368_v28, 0.0  ;;  %v1030_v30 = vpop.f32.mrb[10].mxu0 }
 0x11a   : > { %v383_v32 = vadd.f32 %v1030_v30, %v905_v0  ;;  %v377_v33 = vpop.f32.mrb[11].mxu0 }
 0x11b   : > { %v378_v34 = vadd.f32 %v905_v0, %v377_v33  ;;  %1081 = vmatprep.mubr.f32.mxu1 %v414_v29 }
 0x11c   : > { %1082 = vmatmul.mubr.f32.gmra.mrb[8].mxu1 %v415_v31  ;;  %v417_v37 = vmax.f32 %v383_v32, 0.0 }
 0x11d   : > { %v416_v35 = vmax.f32 %v378_v34, 0.0  ;;  %v1033_v36 = vpop.f32.mrb[12].mxu0 }
 0x11e   : > { %v393_v38 = vadd.f32 %v1033_v36, %v905_v0  ;;  %v387_v39 = vpop.f32.mrb[13].mxu0 }
 0x11f   : > { %v388_v40 = vadd.f32 %v905_v0, %v387_v39  ;;  %1084 = vmatprep.mubr.f32.mxu1 %v416_v35 }
 0x120   : > { %1085 = vmatmul.mubr.f32.gmra.mrb[10].mxu1 %v417_v37  ;;  %v419_v43 = vmax.f32 %v393_v38, 0.0  ;;  %v1434_v37 = vld [vmem:[%s1517_s2 + $0x2] ss:$0 sm:$0xff] }
 0x121   : > { %v418_v41 = vmax.f32 %v388_v40, 0.0  ;;  %v1036_v42 = vpop.f32.mrb[14].mxu0 }
 0x122   : > { %v403_v44 = vadd.f32 %v1036_v42, %v905_v0  ;;  %v397_v45 = vpop.f32.mrb[15].mxu0 }
 0x123   : > { %v398_v46 = vadd.f32 %v905_v0, %v397_v45  ;;  %1087 = vmatprep.mubr.f32.mxu1 %v418_v41 }
 0x124   : > { %1088 = vmatmul.mubr.f32.gmra.mrb[12].mxu1 %v419_v43  ;;  %v421_v48 = vmax.f32 %v403_v44, 0.0 }
 0x125   : > { %v420_v47 = vmax.f32 %v398_v46, 0.0 }
 0x127   : > { %1090 = vmatprep.mubr.f32.mxu1 %v420_v47 }
 0x128   : > { %1091 = vmatmul.mubr.f32.gmra.mrb[14].mxu1 %v421_v48 }
 0x1df   : > { %v1071_v53 = vpop.f32.mrb[0].mxu1 }
 0x1e0   : > { %v516_v54 = vadd.f32 %v1071_v53, %v922_v52  ;;  %v510_v55 = vpop.f32.mrb[1].mxu1 }
 0x1e1   : > { %v511_v56 = vadd.f32 %v922_v52, %v510_v55 }
 0x1e2   : > { %v590_v59 = vmax.f32 %v516_v54, 0.0 }
 0x1e3   : > { %v589_v57 = vmax.f32 %v511_v56, 0.0  ;;  %v1074_v58 = vpop.f32.mrb[2].mxu1 }
 0x1e4   : > { %v526_v60 = vadd.f32 %v1074_v58, %v922_v52  ;;  %v520_v61 = vpop.f32.mrb[3].mxu1 }
 0x1e5   : > { %v521_v62 = vadd.f32 %v922_v52, %v520_v61  ;;  %1125 = vmatprep.mubr.f32.mxu0 %v589_v57 }
 0x1e6   : > { %1126 = vmatmul.mubr.f32.vlgmr.msra.gmra.mrb[16].mxu0 %v590_v59  ;;  %v592_v1 = vmax.f32 %v526_v60, 0.0 }
 0x1e7   : > { %v591_v63 = vmax.f32 %v521_v62, 0.0  ;;  %v1077_v0 = vpop.f32.mrb[4].mxu1 }
 0x1e8   : > { %v536_v2 = vadd.f32 %v1077_v0, %v922_v52  ;;  %v530_v3 = vpop.f32.mrb[5].mxu1 }
 0x1e9   : > { %v531_v4 = vadd.f32 %v922_v52, %v530_v3  ;;  %1128 = vmatprep.mubr.f32.mxu0 %v591_v63 }
 0x1ea   : > { %1129 = vmatmul.mubr.f32.gmra.mrb[18].mxu0 %v592_v1  ;;  %v594_v7 = vmax.f32 %v536_v2, 0.0 }
 0x1eb   : > { %v593_v5 = vmax.f32 %v531_v4, 0.0  ;;  %v1080_v6 = vpop.f32.mrb[6].mxu1 }
 0x1ec   : > { %v546_v8 = vadd.f32 %v1080_v6, %v922_v52  ;;  %v540_v9 = vpop.f32.mrb[7].mxu1 }
 0x1ed   : > { %v541_v10 = vadd.f32 %v922_v52, %v540_v9  ;;  %1131 = vmatprep.mubr.f32.mxu0 %v593_v5 }
 0x1ee   : > { %1132 = vmatmul.mubr.f32.gmra.mrb[20].mxu0 %v594_v7  ;;  %v596_v13 = vmax.f32 %v546_v8, 0.0 }
 0x1ef   : > { %v595_v11 = vmax.f32 %v541_v10, 0.0  ;;  %v1083_v12 = vpop.f32.mrb[8].mxu1 }
 0x1f0   : > { %v556_v14 = vadd.f32 %v1083_v12, %v922_v52  ;;  %v550_v15 = vpop.f32.mrb[9].mxu1 }
 0x1f1   : > { %v551_v16 = vadd.f32 %v922_v52, %v550_v15  ;;  %1134 = vmatprep.mubr.f32.mxu0 %v595_v11 }
 0x1f2   : > { %1135 = vmatmul.mubr.f32.gmra.mrb[22].mxu0 %v596_v13  ;;  %v598_v19 = vmax.f32 %v556_v14, 0.0 }
 0x1f3   : > { %v597_v17 = vmax.f32 %v551_v16, 0.0  ;;  %v1086_v18 = vpop.f32.mrb[10].mxu1 }
 0x1f4   : > { %v566_v20 = vadd.f32 %v1086_v18, %v922_v52  ;;  %v560_v21 = vpop.f32.mrb[11].mxu1 }
 0x1f5   : > { %v561_v22 = vadd.f32 %v922_v52, %v560_v21  ;;  %1137 = vmatprep.mubr.f32.mxu0 %v597_v17 }
 0x1f6   : > { %1138 = vmatmul.mubr.f32.gmra.mrb[24].mxu0 %v598_v19  ;;  %v600_v25 = vmax.f32 %v566_v20, 0.0 }
 0x1f7   : > { %v599_v23 = vmax.f32 %v561_v22, 0.0  ;;  %v1089_v24 = vpop.f32.mrb[12].mxu1 }
 0x1f8   : > { %v576_v26 = vadd.f32 %v1089_v24, %v922_v52  ;;  %v570_v27 = vpop.f32.mrb[13].mxu1 }
 0x1f9   : > { %v571_v28 = vadd.f32 %v922_v52, %v570_v27  ;;  %1140 = vmatprep.mubr.f32.mxu0 %v599_v23 }
 0x1fa   : > { %1141 = vmatmul.mubr.f32.gmra.mrb[26].mxu0 %v600_v25  ;;  %v602_v31 = vmax.f32 %v576_v26, 0.0 }
 0x1fb   : > { %v601_v29 = vmax.f32 %v571_v28, 0.0  ;;  %v1092_v30 = vpop.f32.mrb[14].mxu1 }
 0x1fc   : > { %v586_v32 = vadd.f32 %v1092_v30, %v922_v52  ;;  %v580_v33 = vpop.f32.mrb[15].mxu1 }
 0x1fd   : > { %v581_v34 = vadd.f32 %v922_v52, %v580_v33  ;;  %1143 = vmatprep.mubr.f32.mxu0 %v601_v29 }
 0x1fe   : > { %1144 = vmatmul.mubr.f32.gmra.mrb[28].mxu0 %v602_v31  ;;  %v604_v36 = vmax.f32 %v586_v32, 0.0 }
 0x1ff   : > { %v603_v35 = vmax.f32 %v581_v34, 0.0 }
 0x201   : > { %1146 = vmatprep.mubr.f32.mxu0 %v603_v35 }
 0x202   : > { %1147 = vmatmul.mubr.f32.gmra.mrb[30].mxu0 %v604_v36 }
 0x2b9   : > { %v1127_v38 = vpop.f32.mrb[16].mxu0 }
 0x2ba   : > { %v699_v39 = vadd.f32 %v1127_v38, %v1434_v37  ;;  %v693_v40 = vpop.f32.mrb[17].mxu0 }
 0x2bb   : > { %v694_v41 = vadd.f32 %v1434_v37, %v693_v40 }
 0x2bc   : > { %1238 = vtanh.f32 %v699_v39 }
 0x2bd   : > { %1240 = vtanh.f32 %v694_v41  ;;  %v1130_v42 = vpop.f32.mrb[18].mxu0 }
 0x2be   : > { %v709_v43 = vadd.f32 %v1130_v42, %v1434_v37  ;;  %v703_v44 = vpop.f32.mrb[19].mxu0 }
 0x2bf   : > { %v704_v45 = vadd.f32 %v1434_v37, %v703_v44 }
 0x2c0   : > { %1242 = vtanh.f32 %v709_v43 }
 0x2c1   : > { %1244 = vtanh.f32 %v704_v45  ;;  %v1133_v46 = vpop.f32.mrb[20].mxu0 }
 0x2c2   : > { %v719_v47 = vadd.f32 %v1133_v46, %v1434_v37  ;;  %v713_v48 = vpop.f32.mrb[21].mxu0 }
 0x2c3   : > { %v714_v49 = vadd.f32 %v1434_v37, %v713_v48 }
 0x2c4   : > { %1246 = vtanh.f32 %v719_v47 }
 0x2c5   : > { %1248 = vtanh.f32 %v714_v49  ;;  %v1136_v51 = vpop.f32.mrb[22].mxu0 }
 0x2c6   : > { %v1239_v52 = vpop.eup %1238  ;;  %v729_v53 = vadd.f32 %v1136_v51, %v1434_v37  ;;  %v723_v54 = vpop.f32.mrb[23].mxu0 }
 0x2c7   : > { %v1241_v55 = vpop.eup %1240  ;;  %v794_v56 = vmul.f32 %v1239_v52, %v1445_v50  ;;  %v724_v57 = vadd.f32 %v1434_v37, %v723_v54 }
 0x2c8   : > { %v793_v58 = vmul.f32 %v1241_v55, %v1445_v50  ;;  %1250 = vtanh.f32 %v729_v53 }
 0x2c9   : > { %811 = vst.msk [vmem:[%s1452_s20 + $0x8] sm:$0xff] %vm809_vm1, %v794_v56  ;;  %1252 = vtanh.f32 %v724_v57  ;;  %v1139_v59 = vpop.f32.mrb[24].mxu0 }
 0x2ca   : > { %v1243_v60 = vpop.eup %1242  ;;  %810 = vst.msk [vmem:[%s1452_s20] sm:$0xff] %vm809_vm1, %v793_v58  ;;  %v739_v61 = vadd.f32 %v1139_v59, %v1434_v37  ;;  %v733_v62 = vpop.f32.mrb[25].mxu0 }
 0x2cb   : > { %v1245_v63 = vpop.eup %1244  ;;  %v796_v0 = vmul.f32 %v1243_v60, %v1445_v50  ;;  %v734_v1 = vadd.f32 %v1434_v37, %v733_v62 }
 0x2cc   : > { %v795_v2 = vmul.f32 %v1245_v63, %v1445_v50  ;;  %1254 = vtanh.f32 %v739_v61 }
 0x2cd   : > { %813 = vst.msk [vmem:[%s1452_s20 + $0x18] sm:$0xff] %vm809_vm1, %v796_v0  ;;  %1256 = vtanh.f32 %v734_v1  ;;  %v1142_v3 = vpop.f32.mrb[26].mxu0 }
 0x2ce   : > { %v1247_v4 = vpop.eup %1246  ;;  %812 = vst.msk [vmem:[%s1452_s20 + $0x10] sm:$0xff] %vm809_vm1, %v795_v2  ;;  %v749_v5 = vadd.f32 %v1142_v3, %v1434_v37  ;;  %v743_v6 = vpop.f32.mrb[27].mxu0 }
 0x2cf   : > { %v1249_v7 = vpop.eup %1248  ;;  %v798_v8 = vmul.f32 %v1247_v4, %v1445_v50  ;;  %v744_v9 = vadd.f32 %v1434_v37, %v743_v6 }
 0x2d0   : > { %v797_v10 = vmul.f32 %v1249_v7, %v1445_v50  ;;  %1258 = vtanh.f32 %v749_v5 }
 0x2d1   : > { %815 = vst.msk [vmem:[%s1452_s20 + $0x28] sm:$0xff] %vm809_vm1, %v798_v8  ;;  %1260 = vtanh.f32 %v744_v9  ;;  %v1145_v11 = vpop.f32.mrb[28].mxu0 }
 0x2d2   : > { %v1251_v12 = vpop.eup %1250  ;;  %814 = vst.msk [vmem:[%s1452_s20 + $0x20] sm:$0xff] %vm809_vm1, %v797_v10  ;;  %v759_v13 = vadd.f32 %v1145_v11, %v1434_v37  ;;  %v753_v14 = vpop.f32.mrb[29].mxu0 }
 0x2d3   : > { %v1253_v15 = vpop.eup %1252  ;;  %v800_v16 = vmul.f32 %v1251_v12, %v1445_v50  ;;  %v754_v17 = vadd.f32 %v1434_v37, %v753_v14 }
 0x2d4   : > { %v799_v18 = vmul.f32 %v1253_v15, %v1445_v50  ;;  %1262 = vtanh.f32 %v759_v13 }
 0x2d5   : > { %817 = vst.msk [vmem:[%s1452_s20 + $0x38] sm:$0xff] %vm809_vm1, %v800_v16  ;;  %1264 = vtanh.f32 %v754_v17  ;;  %v1148_v19 = vpop.f32.mrb[30].mxu0 }
 0x2d6   : > { %v1255_v20 = vpop.eup %1254  ;;  %816 = vst.msk [vmem:[%s1452_s20 + $0x30] sm:$0xff] %vm809_vm1, %v799_v18  ;;  %v769_v21 = vadd.f32 %v1148_v19, %v1434_v37  ;;  %v763_v22 = vpop.f32.mrb[31].mxu0 }
 0x2d7   : > { %v1257_v23 = vpop.eup %1256  ;;  %v802_v24 = vmul.f32 %v1255_v20, %v1445_v50  ;;  %v764_v25 = vadd.f32 %v1434_v37, %v763_v22 }
 0x2d8   : > { %v801_v26 = vmul.f32 %v1257_v23, %v1445_v50  ;;  %1266 = vtanh.f32 %v769_v21 }
 0x2d9   : > { %819 = vst.msk [vmem:[%s1452_s20 + $0x48] sm:$0xff] %vm809_vm1, %v802_v24  ;;  %1268 = vtanh.f32 %v764_v25 }
 0x2da   : > { %v1259_v27 = vpop.eup %1258  ;;  %818 = vst.msk [vmem:[%s1452_s20 + $0x40] sm:$0xff] %vm809_vm1, %v801_v26 }
 0x2db   : > { %v1261_v28 = vpop.eup %1260  ;;  %v804_v29 = vmul.f32 %v1259_v27, %v1445_v50 }
 0x2dc   : > { %v803_v30 = vmul.f32 %v1261_v28, %v1445_v50 }
 0x2dd   : > { %821 = vst.msk [vmem:[%s1452_s20 + $0x58] sm:$0xff] %vm809_vm1, %v804_v29 }
 0x2de   : > { %v1263_v31 = vpop.eup %1262  ;;  %820 = vst.msk [vmem:[%s1452_s20 + $0x50] sm:$0xff] %vm809_vm1, %v803_v30 }
 0x2df   : > { %v1265_v32 = vpop.eup %1264  ;;  %v806_v33 = vmul.f32 %v1263_v31, %v1445_v50 }
 0x2e0   : > { %v805_v34 = vmul.f32 %v1265_v32, %v1445_v50 }
 0x2e1   : > { %823 = vst.msk [vmem:[%s1452_s20 + $0x68] sm:$0xff] %vm809_vm1, %v806_v33 }
 0x2e2   : > { %v1267_v35 = vpop.eup %1266  ;;  %822 = vst.msk [vmem:[%s1452_s20 + $0x60] sm:$0xff] %vm809_vm1, %v805_v34 }
 0x2e3   : > { %v1269_v36 = vpop.eup %1268  ;;  %v808_v37 = vmul.f32 %v1267_v35, %v1445_v50 }
 0x2e4   : > { %v807_v38 = vmul.f32 %v1269_v36, %v1445_v50 }
 0x2e5   : > { %825 = vst.msk [vmem:[%s1452_s20 + $0x78] sm:$0xff] %vm809_vm1, %v808_v37 }
 0x2e6   : > { %824 = vst.msk [vmem:[%s1452_s20 + $0x70] sm:$0xff] %vm809_vm1, %v807_v38 }
 0x2e7 PF: > { %s14_s12 = sadd.s32 1, %s1308_s12  }
 0x2e8   : > { %p11_p3 = scmp.ge.s32.totalorder %s14_s12, 4  }
 0x2ea   :  { %13 = sbr.rel (!%p11_p3) target bundleno = 1 (0x1), region = 69 }
 0x2f1   :  { %848 = vsyncpa [#allocation3], 1 }
 0x2f2   :  { %850 = vsyncpa [#allocation3 + $0x1], 1 }

</bundles_post_ra>
